<compile_context>
chip_gen: v6e
topology: v6e:2x2x1
jax: 0.10.0
libtpu: 0.0.40
codegen_flags: <defaults>
</compile_context>

<pallas_src>
import jax
import jax.numpy as jnp
from jax import lax
from jax.experimental import pallas as pl
from jax.experimental.pallas import tpu as pltpu

LANE = 128
VMEM_SPEC = pl.BlockSpec(memory_space=pltpu.MemorySpace.VMEM)
SMEM_SPEC = pl.BlockSpec(memory_space=pltpu.MemorySpace.SMEM)


# ------------------------------ fused kernel -------------------------------

def _f2gnn_kernel(inv_ref,           # SMEM [L+1]            f32  1/(k+1)
                  x_ref,             # VMEM [N, Fin]         bf16
                  a_ref,             # VMEM [N, N]           bf16  normalized adj
                  w1_ref, b1_ref,    # VMEM [Fin, H] bf16 /  [1, H] f32
                  gw_ref, gb_ref,    # VMEM [L, H, H] bf16 / [L, 1, H] f32
                  cw1_ref, cb1_ref,  # VMEM [H, H]  bf16 /   [1, H] f32
                  cw2_ref, cb2_ref,  # VMEM [H, OP] bf16 /   [1, OP] f32
                  o_ref,             # VMEM [N, OP]          f32
                  s_ref):            # VMEM scratch [N, H]   f32  running sum
    num_layers = gw_ref.shape[0]

    # lin1 (+ eval-mode dropout == identity). This is features[0].
    s_ref[...] = jnp.dot(x_ref[...], w1_ref[...],
                         preferred_element_type=jnp.float32) + b1_ref[...]

    # Normalized adjacency loaded once; reused by every layer.
    a = a_ref[...]

    def layer_body(layer, carry):
        # skip ops are identity; fuse 'l_mean' (act='linear') over
        # features[0..layer] == running_sum * 1/(layer+1).
        fused = (s_ref[...] * inv_ref[layer]).astype(jnp.bfloat16)
        # NaOp 'gcn' with act='relu':  relu(A_norm @ (fused @ W) + b)
        xw = jnp.dot(fused, gw_ref[layer], preferred_element_type=jnp.float32)
        agg = jnp.dot(a, xw.astype(jnp.bfloat16),
                      preferred_element_type=jnp.float32) + gb_ref[layer]
        # eval-mode dropout == identity; appending to the feature list is
        # just adding the new feature into the running sum.
        s_ref[...] = s_ref[...] + jnp.maximum(agg, 0.0)
        return carry

    lax.fori_loop(0, num_layers, layer_body, 0, unroll=True)

    # Output edge: skip(identity) on all L+1 features -> 'l_mean' -> MLP head.
    fused = (s_ref[...] * inv_ref[num_layers]).astype(jnp.bfloat16)
    hid = jnp.maximum(
        jnp.dot(fused, cw1_ref[...], preferred_element_type=jnp.float32)
        + cb1_ref[...], 0.0)
    o_ref[...] = jnp.dot(hid.astype(jnp.bfloat16), cw2_ref[...],
                         preferred_element_type=jnp.float32) + cb2_ref[...]


# ------------------------------- glue (JAX) --------------------------------

def init_params(key, in_dim, hidden, out_dim, num_layers):
    def glorot(k, shape):
        fan_in, fan_out = shape[0], shape[1]
        lim = jnp.sqrt(6.0 / (fan_in + fan_out))
        return jax.random.uniform(k, shape, jnp.float32, -lim, lim)

    keys = jax.random.split(key, 3 + num_layers)
    return {
        "lin1_w": glorot(keys[0], (in_dim, hidden)),
        "lin1_b": jnp.zeros((1, hidden), jnp.float32),
        "cls_w1": glorot(keys[1], (hidden, hidden)),
        "cls_b1": jnp.zeros((1, hidden), jnp.float32),
        "cls_w2": glorot(keys[2], (hidden, out_dim)),
        "cls_b2": jnp.zeros((1, out_dim), jnp.float32),
        "gcn_w": [glorot(keys[3 + i], (hidden, hidden)) for i in range(num_layers)],
        "gcn_b": [jnp.zeros((1, hidden), jnp.float32) for _ in range(num_layers)],
    }


def normalize_adjacency(edge_index, n):
    # dense A_hat = sym(A) with self loops, then D^-1/2 A_hat D^-1/2
    src, dst = edge_index[0], edge_index[1]
    adj = jnp.zeros((n, n), jnp.float32).at[src, dst].set(1.0)
    adj = jnp.maximum(adj, adj.T)
    adj = jnp.maximum(adj, jnp.eye(n, dtype=jnp.float32))
    deg = adj.sum(axis=1)
    dinv = jax.lax.rsqrt(deg)
    return dinv[:, None] * adj * dinv[None, :]


def network_gnn_forward(params, x, a_norm, num_layers, out_dim):
    n, in_dim = x.shape
    hidden = params["lin1_w"].shape[1]
    out_pad = ((out_dim + LANE - 1) // LANE) * LANE

    # Precomputed 1/(k+1) table for the running-sum 'l_mean' fuse (SMEM).
    inv_counts = 1.0 / jnp.arange(1, num_layers + 2, dtype=jnp.float32)

    # Stacked per-layer GCN weights / biases; bf16 operands, f32 biases.
    gw = jnp.stack(params["gcn_w"]).astype(jnp.bfloat16)       # [L, H, H]
    gb = jnp.stack(params["gcn_b"]).astype(jnp.float32)        # [L, 1, H]

    # Lane-pad the classifier head so the final store is 128-lane dense.
    w2p = jnp.zeros((hidden, out_pad), jnp.float32).at[:, :out_dim].set(
        params["cls_w2"]).astype(jnp.bfloat16)
    b2p = jnp.zeros((1, out_pad), jnp.float32).at[:, :out_dim].set(
        params["cls_b2"])

    operands = (
        inv_counts,
        x.astype(jnp.bfloat16),
        a_norm.astype(jnp.bfloat16),
        params["lin1_w"].astype(jnp.bfloat16), params["lin1_b"],
        gw, gb,
        params["cls_w1"].astype(jnp.bfloat16), params["cls_b1"],
        w2p, b2p,
    )

    flops = (2 * n * in_dim * hidden
             + num_layers * (2 * n * hidden * hidden + 2 * n * n * hidden)
             + 2 * n * hidden * hidden + 2 * n * hidden * out_pad)
    bytes_accessed = (sum(int(o.size) * o.dtype.itemsize for o in operands)
                      + n * out_pad * 4)

    out = pl.pallas_call(
        _f2gnn_kernel,
        out_shape=jax.ShapeDtypeStruct((n, out_pad), jnp.float32),
        in_specs=[SMEM_SPEC] + [VMEM_SPEC] * (len(operands) - 1),
        out_specs=VMEM_SPEC,
        scratch_shapes=[pltpu.VMEM((n, hidden), jnp.float32)],
        cost_estimate=pl.CostEstimate(flops=int(flops), transcendentals=0,
                                      bytes_accessed=int(bytes_accessed)),
    )(*operands)

    # TODO(synk): for large graphs (N >~ 4k) the full A_norm no longer fits
    # VMEM (especially v7x's 64 MiB); add a row-block grid over A / the output
    # with dimension_semantics=("parallel", ...) before scaling N.
    # TODO(synk): batch_norm / layer_norm branches are disabled (args flags
    # False); dropout is the eval-mode identity.
    return out[:, :out_dim]


def network_gnn_reference(params, x, a_norm, num_layers):
    """Pure-JAX f32 reference mirroring the PyTorch forward (eval mode)."""
    h = x @ params["lin1_w"] + params["lin1_b"]
    features = [h]
    for layer in range(num_layers):
        fused = jnp.mean(jnp.stack(features[: layer + 1], axis=0), axis=0)
        agg = a_norm @ (fused @ params["gcn_w"][layer]) + params["gcn_b"][layer]
        features.append(jnp.maximum(agg, 0.0))
    fused = jnp.mean(jnp.stack(features, axis=0), axis=0)
    hid = jnp.maximum(fused @ params["cls_w1"] + params["cls_b1"], 0.0)
    return hid @ params["cls_w2"] + params["cls_b2"]


if __name__ == "__main__":
    key = jax.random.PRNGKey(0)
    N, IN_DIM, HIDDEN, OUT_DIM, NUM_LAYERS = 64, 32, 128, 16, 4
    E = 256

    k_x, k_e, k_p = jax.random.split(key, 3)
    x = jax.random.normal(k_x, (N, IN_DIM), jnp.float32)
    edge_index = jax.random.randint(k_e, (2, E), 0, N, jnp.int32)

    a_norm = normalize_adjacency(edge_index, N)
    params = init_params(k_p, IN_DIM, HIDDEN, OUT_DIM, NUM_LAYERS)

    out = network_gnn_forward(params, x, a_norm, NUM_LAYERS, OUT_DIM)
    out = jax.block_until_ready(out)

    ref = network_gnn_reference(params, x, a_norm, NUM_LAYERS)
    max_err = float(jnp.max(jnp.abs(out - ref)))

    assert out.shape == (N, OUT_DIM) and out.dtype == jnp.float32
    assert bool(jnp.all(jnp.isfinite(out)))
    assert max_err < 1e-1, f"mismatch vs f32 reference: {max_err}"
    print("KERNEL_OK")
</pallas_src>

<mosaic_0001>
module attributes {stable_mosaic.version = 11 : i64} {
  func.func @_f2gnn_kernel(%arg0: memref<5xf32, #tpu.memory_space<smem>>, %arg1: memref<64x32xbf16, #tpu.memory_space<vmem>>, %arg2: memref<64x64xbf16, #tpu.memory_space<vmem>>, %arg3: memref<32x128xbf16, #tpu.memory_space<vmem>>, %arg4: memref<1x128xf32, #tpu.memory_space<vmem>>, %arg5: memref<4x128x128xbf16, #tpu.memory_space<vmem>>, %arg6: memref<4x1x128xf32, #tpu.memory_space<vmem>>, %arg7: memref<128x128xbf16, #tpu.memory_space<vmem>>, %arg8: memref<1x128xf32, #tpu.memory_space<vmem>>, %arg9: memref<128x128xbf16, #tpu.memory_space<vmem>>, %arg10: memref<1x128xf32, #tpu.memory_space<vmem>>, %arg11: memref<64x128xf32, #tpu.memory_space<vmem>>, %arg12: memref<64x128xf32, #tpu.memory_space<vmem>>) attributes {dimension_semantics = [], scalar_prefetch = 0 : i64, scratch_operands = 1 : i64, tpu.core_type = #tpu.core_type<tc>} {
    %c0 = arith.constant 0 : index
    %c0_0 = arith.constant 0 : index
    %0 = vector.load %arg1[%c0, %c0_0] : memref<64x32xbf16, #tpu.memory_space<vmem>>, vector<64x32xbf16>
    %c0_1 = arith.constant 0 : index
    %c0_2 = arith.constant 0 : index
    %1 = vector.load %arg3[%c0_1, %c0_2] : memref<32x128xbf16, #tpu.memory_space<vmem>>, vector<32x128xbf16>
    %cst = arith.constant dense<0.000000e+00> : vector<64x128xf32>
    %2 = tpu.matmul %0, %1, %cst {dimension_numbers = #tpu.dot_dimension_numbers<[1], [0], [0], [1], [0, 0, 1, 1], [], []>} : vector<64x32xbf16>, vector<32x128xbf16>, vector<64x128xf32> -> vector<64x128xf32>
    %c0_3 = arith.constant 0 : index
    %c0_4 = arith.constant 0 : index
    %3 = vector.load %arg4[%c0_3, %c0_4] : memref<1x128xf32, #tpu.memory_space<vmem>>, vector<1x128xf32>
    %4 = vector.broadcast %3 : vector<1x128xf32> to vector<64x128xf32>
    %5 = arith.addf %2, %4 : vector<64x128xf32>
    %c0_5 = arith.constant 0 : index
    %c0_6 = arith.constant 0 : index
    %6 = vector.load %arg12[%c0_5, %c0_6] : memref<64x128xf32, #tpu.memory_space<vmem>>, vector<64x128xf32>
    tpu.vector_store %arg12[%c0_5, %c0_6], %5 {strides = array<i32>} : memref<64x128xf32, #tpu.memory_space<vmem>>, vector<64x128xf32>,
    %c0_7 = arith.constant 0 : index
    %c0_8 = arith.constant 0 : index
    %7 = vector.load %arg2[%c0_7, %c0_8] : memref<64x64xbf16, #tpu.memory_space<vmem>>, vector<64x64xbf16>
    %c0_i32 = arith.constant 0 : i32
    %c0_9 = arith.constant 0 : index
    %c0_10 = arith.constant 0 : index
    %8 = vector.load %arg12[%c0_9, %c0_10] : memref<64x128xf32, #tpu.memory_space<vmem>>, vector<64x128xf32>
    %9 = arith.index_cast %c0_i32 : i32 to index
    %10 = memref.load %arg0[%9] : memref<5xf32, #tpu.memory_space<smem>>
    %11 = vector.broadcast %10 : f32 to vector<64x128xf32>
    %12 = arith.mulf %8, %11 : vector<64x128xf32>
    %13 = arith.truncf %12 : vector<64x128xf32> to vector<64x128xbf16>
    %14 = arith.index_cast %c0_i32 : i32 to index
    %c0_11 = arith.constant 0 : index
    %c0_12 = arith.constant 0 : index
    %15 = vector.load %arg5[%14, %c0_11, %c0_12] : memref<4x128x128xbf16, #tpu.memory_space<vmem>>, vector<1x128x128xbf16>
    %16 = vector.shape_cast %15 : vector<1x128x128xbf16> to vector<128x128xbf16>
    %cst_13 = arith.constant dense<0.000000e+00> : vector<64x128xf32>
    %17 = tpu.matmul %13, %16, %cst_13 {dimension_numbers = #tpu.dot_dimension_numbers<[1], [0], [0], [1], [0, 0, 1, 1], [], []>} : vector<64x128xbf16>, vector<128x128xbf16>, vector<64x128xf32> -> vector<64x128xf32>
    %18 = arith.truncf %17 : vector<64x128xf32> to vector<64x128xbf16>
    %cst_14 = arith.constant dense<0.000000e+00> : vector<64x128xf32>
    %19 = tpu.matmul %7, %18, %cst_14 {dimension_numbers = #tpu.dot_dimension_numbers<[1], [0], [0], [1], [0, 0, 1, 1], [], []>} : vector<64x64xbf16>, vector<64x128xbf16>, vector<64x128xf32> -> vector<64x128xf32>
    %20 = arith.index_cast %c0_i32 : i32 to index
    %c0_15 = arith.constant 0 : index
    %c0_16 = arith.constant 0 : index
    %21 = vector.load %arg6[%20, %c0_15, %c0_16] : memref<4x1x128xf32, #tpu.memory_space<vmem>>, vector<1x1x128xf32>
    %22 = vector.shape_cast %21 : vector<1x1x128xf32> to vector<1x128xf32>
    %23 = vector.broadcast %22 : vector<1x128xf32> to vector<64x128xf32>
    %24 = arith.addf %19, %23 : vector<64x128xf32>
    %c0_17 = arith.constant 0 : index
    %c0_18 = arith.constant 0 : index
    %25 = vector.load %arg12[%c0_17, %c0_18] : memref<64x128xf32, #tpu.memory_space<vmem>>, vector<64x128xf32>
    %cst_19 = arith.constant 0.000000e+00 : f32
    %26 = vector.broadcast %cst_19 : f32 to vector<64x128xf32>
    %27 = arith.maximumf %24, %26 : vector<64x128xf32>
    %28 = arith.addf %25, %27 : vector<64x128xf32>
    %c0_20 = arith.constant 0 : index
    %c0_21 = arith.constant 0 : index
    %29 = vector.load %arg12[%c0_20, %c0_21] : memref<64x128xf32, #tpu.memory_space<vmem>>, vector<64x128xf32>
    tpu.vector_store %arg12[%c0_20, %c0_21], %28 {strides = array<i32>} : memref<64x128xf32, #tpu.memory_space<vmem>>, vector<64x128xf32>,
    %c1_i32 = arith.constant 1 : i32
    %c0_22 = arith.constant 0 : index
    %c0_23 = arith.constant 0 : index
    %30 = vector.load %arg12[%c0_22, %c0_23] : memref<64x128xf32, #tpu.memory_space<vmem>>, vector<64x128xf32>
    %31 = arith.index_cast %c1_i32 : i32 to index
    %32 = memref.load %arg0[%31] : memref<5xf32, #tpu.memory_space<smem>>
    %33 = vector.broadcast %32 : f32 to vector<64x128xf32>
    %34 = arith.mulf %30, %33 : vector<64x128xf32>
    %35 = arith.truncf %34 : vector<64x128xf32> to vector<64x128xbf16>
    %36 = arith.index_cast %c1_i32 : i32 to index
    %c0_24 = arith.constant 0 : index
    %c0_25 = arith.constant 0 : index
    %37 = vector.load %arg5[%36, %c0_24, %c0_25] : memref<4x128x128xbf16, #tpu.memory_space<vmem>>, vector<1x128x128xbf16>
    %38 = vector.shape_cast %37 : vector<1x128x128xbf16> to vector<128x128xbf16>
    %cst_26 = arith.constant dense<0.000000e+00> : vector<64x128xf32>
    %39 = tpu.matmul %35, %38, %cst_26 {dimension_numbers = #tpu.dot_dimension_numbers<[1], [0], [0], [1], [0, 0, 1, 1], [], []>} : vector<64x128xbf16>, vector<128x128xbf16>, vector<64x128xf32> -> vector<64x128xf32>
    %40 = arith.truncf %39 : vector<64x128xf32> to vector<64x128xbf16>
    %cst_27 = arith.constant dense<0.000000e+00> : vector<64x128xf32>
    %41 = tpu.matmul %7, %40, %cst_27 {dimension_numbers = #tpu.dot_dimension_numbers<[1], [0], [0], [1], [0, 0, 1, 1], [], []>} : vector<64x64xbf16>, vector<64x128xbf16>, vector<64x128xf32> -> vector<64x128xf32>
    %42 = arith.index_cast %c1_i32 : i32 to index
    %c0_28 = arith.constant 0 : index
    %c0_29 = arith.constant 0 : index
    %43 = vector.load %arg6[%42, %c0_28, %c0_29] : memref<4x1x128xf32, #tpu.memory_space<vmem>>, vector<1x1x128xf32>
    %44 = vector.shape_cast %43 : vector<1x1x128xf32> to vector<1x128xf32>
    %45 = vector.broadcast %44 : vector<1x128xf32> to vector<64x128xf32>
    %46 = arith.addf %41, %45 : vector<64x128xf32>
    %c0_30 = arith.constant 0 : index
    %c0_31 = arith.constant 0 : index
    %47 = vector.load %arg12[%c0_30, %c0_31] : memref<64x128xf32, #tpu.memory_space<vmem>>, vector<64x128xf32>
    %cst_32 = arith.constant 0.000000e+00 : f32
    %48 = vector.broadcast %cst_32 : f32 to vector<64x128xf32>
    %49 = arith.maximumf %46, %48 : vector<64x128xf32>
    %50 = arith.addf %47, %49 : vector<64x128xf32>
    %c0_33 = arith.constant 0 : index
    %c0_34 = arith.constant 0 : index
    %51 = vector.load %arg12[%c0_33, %c0_34] : memref<64x128xf32, #tpu.memory_space<vmem>>, vector<64x128xf32>
    tpu.vector_store %arg12[%c0_33, %c0_34], %50 {strides = array<i32>} : memref<64x128xf32, #tpu.memory_space<vmem>>, vector<64x128xf32>,
    %c2_i32 = arith.constant 2 : i32
    %c0_35 = arith.constant 0 : index
    %c0_36 = arith.constant 0 : index
    %52 = vector.load %arg12[%c0_35, %c0_36] : memref<64x128xf32, #tpu.memory_space<vmem>>, vector<64x128xf32>
    %53 = arith.index_cast %c2_i32 : i32 to index
    %54 = memref.load %arg0[%53] : memref<5xf32, #tpu.memory_space<smem>>
    %55 = vector.broadcast %54 : f32 to vector<64x128xf32>
    %56 = arith.mulf %52, %55 : vector<64x128xf32>
    %57 = arith.truncf %56 : vector<64x128xf32> to vector<64x128xbf16>
    %58 = arith.index_cast %c2_i32 : i32 to index
    %c0_37 = arith.constant 0 : index
    %c0_38 = arith.constant 0 : index
    %59 = vector.load %arg5[%58, %c0_37, %c0_38] : memref<4x128x128xbf16, #tpu.memory_space<vmem>>, vector<1x128x128xbf16>
    %60 = vector.shape_cast %59 : vector<1x128x128xbf16> to vector<128x128xbf16>
    %cst_39 = arith.constant dense<0.000000e+00> : vector<64x128xf32>
    %61 = tpu.matmul %57, %60, %cst_39 {dimension_numbers = #tpu.dot_dimension_numbers<[1], [0], [0], [1], [0, 0, 1, 1], [], []>} : vector<64x128xbf16>, vector<128x128xbf16>, vector<64x128xf32> -> vector<64x128xf32>
    %62 = arith.truncf %61 : vector<64x128xf32> to vector<64x128xbf16>
    %cst_40 = arith.constant dense<0.000000e+00> : vector<64x128xf32>
    %63 = tpu.matmul %7, %62, %cst_40 {dimension_numbers = #tpu.dot_dimension_numbers<[1], [0], [0], [1], [0, 0, 1, 1], [], []>} : vector<64x64xbf16>, vector<64x128xbf16>, vector<64x128xf32> -> vector<64x128xf32>
    %64 = arith.index_cast %c2_i32 : i32 to index
    %c0_41 = arith.constant 0 : index
    %c0_42 = arith.constant 0 : index
    %65 = vector.load %arg6[%64, %c0_41, %c0_42] : memref<4x1x128xf32, #tpu.memory_space<vmem>>, vector<1x1x128xf32>
    %66 = vector.shape_cast %65 : vector<1x1x128xf32> to vector<1x128xf32>
    %67 = vector.broadcast %66 : vector<1x128xf32> to vector<64x128xf32>
    %68 = arith.addf %63, %67 : vector<64x128xf32>
    %c0_43 = arith.constant 0 : index
    %c0_44 = arith.constant 0 : index
    %69 = vector.load %arg12[%c0_43, %c0_44] : memref<64x128xf32, #tpu.memory_space<vmem>>, vector<64x128xf32>
    %cst_45 = arith.constant 0.000000e+00 : f32
    %70 = vector.broadcast %cst_45 : f32 to vector<64x128xf32>
    %71 = arith.maximumf %68, %70 : vector<64x128xf32>
    %72 = arith.addf %69, %71 : vector<64x128xf32>
    %c0_46 = arith.constant 0 : index
    %c0_47 = arith.constant 0 : index
    %73 = vector.load %arg12[%c0_46, %c0_47] : memref<64x128xf32, #tpu.memory_space<vmem>>, vector<64x128xf32>
    tpu.vector_store %arg12[%c0_46, %c0_47], %72 {strides = array<i32>} : memref<64x128xf32, #tpu.memory_space<vmem>>, vector<64x128xf32>,
    %c3_i32 = arith.constant 3 : i32
    %c0_48 = arith.constant 0 : index
    %c0_49 = arith.constant 0 : index
    %74 = vector.load %arg12[%c0_48, %c0_49] : memref<64x128xf32, #tpu.memory_space<vmem>>, vector<64x128xf32>
    %75 = arith.index_cast %c3_i32 : i32 to index
    %76 = memref.load %arg0[%75] : memref<5xf32, #tpu.memory_space<smem>>
    %77 = vector.broadcast %76 : f32 to vector<64x128xf32>
    %78 = arith.mulf %74, %77 : vector<64x128xf32>
    %79 = arith.truncf %78 : vector<64x128xf32> to vector<64x128xbf16>
    %80 = arith.index_cast %c3_i32 : i32 to index
    %c0_50 = arith.constant 0 : index
    %c0_51 = arith.constant 0 : index
    %81 = vector.load %arg5[%80, %c0_50, %c0_51] : memref<4x128x128xbf16, #tpu.memory_space<vmem>>, vector<1x128x128xbf16>
    %82 = vector.shape_cast %81 : vector<1x128x128xbf16> to vector<128x128xbf16>
    %cst_52 = arith.constant dense<0.000000e+00> : vector<64x128xf32>
    %83 = tpu.matmul %79, %82, %cst_52 {dimension_numbers = #tpu.dot_dimension_numbers<[1], [0], [0], [1], [0, 0, 1, 1], [], []>} : vector<64x128xbf16>, vector<128x128xbf16>, vector<64x128xf32> -> vector<64x128xf32>
    %84 = arith.truncf %83 : vector<64x128xf32> to vector<64x128xbf16>
    %cst_53 = arith.constant dense<0.000000e+00> : vector<64x128xf32>
    %85 = tpu.matmul %7, %84, %cst_53 {dimension_numbers = #tpu.dot_dimension_numbers<[1], [0], [0], [1], [0, 0, 1, 1], [], []>} : vector<64x64xbf16>, vector<64x128xbf16>, vector<64x128xf32> -> vector<64x128xf32>
    %86 = arith.index_cast %c3_i32 : i32 to index
    %c0_54 = arith.constant 0 : index
    %c0_55 = arith.constant 0 : index
    %87 = vector.load %arg6[%86, %c0_54, %c0_55] : memref<4x1x128xf32, #tpu.memory_space<vmem>>, vector<1x1x128xf32>
    %88 = vector.shape_cast %87 : vector<1x1x128xf32> to vector<1x128xf32>
    %89 = vector.broadcast %88 : vector<1x128xf32> to vector<64x128xf32>
    %90 = arith.addf %85, %89 : vector<64x128xf32>
    %c0_56 = arith.constant 0 : index
    %c0_57 = arith.constant 0 : index
    %91 = vector.load %arg12[%c0_56, %c0_57] : memref<64x128xf32, #tpu.memory_space<vmem>>, vector<64x128xf32>
    %cst_58 = arith.constant 0.000000e+00 : f32
    %92 = vector.broadcast %cst_58 : f32 to vector<64x128xf32>
    %93 = arith.maximumf %90, %92 : vector<64x128xf32>
    %94 = arith.addf %91, %93 : vector<64x128xf32>
    %c0_59 = arith.constant 0 : index
    %c0_60 = arith.constant 0 : index
    %95 = vector.load %arg12[%c0_59, %c0_60] : memref<64x128xf32, #tpu.memory_space<vmem>>, vector<64x128xf32>
    tpu.vector_store %arg12[%c0_59, %c0_60], %94 {strides = array<i32>} : memref<64x128xf32, #tpu.memory_space<vmem>>, vector<64x128xf32>,
    %c4_i32 = arith.constant 4 : i32
    %c0_61 = arith.constant 0 : index
    %c0_62 = arith.constant 0 : index
    %96 = vector.load %arg12[%c0_61, %c0_62] : memref<64x128xf32, #tpu.memory_space<vmem>>, vector<64x128xf32>
    %c4 = arith.constant 4 : index
    %97 = memref.load %arg0[%c4] : memref<5xf32, #tpu.memory_space<smem>>
    %98 = vector.broadcast %97 : f32 to vector<64x128xf32>
    %99 = arith.mulf %96, %98 : vector<64x128xf32>
    %100 = arith.truncf %99 : vector<64x128xf32> to vector<64x128xbf16>
    %c0_63 = arith.constant 0 : index
    %c0_64 = arith.constant 0 : index
    %101 = vector.load %arg7[%c0_63, %c0_64] : memref<128x128xbf16, #tpu.memory_space<vmem>>, vector<128x128xbf16>
    %cst_65 = arith.constant dense<0.000000e+00> : vector<64x128xf32>
    %102 = tpu.matmul %100, %101, %cst_65 {dimension_numbers = #tpu.dot_dimension_numbers<[1], [0], [0], [1], [0, 0, 1, 1], [], []>} : vector<64x128xbf16>, vector<128x128xbf16>, vector<64x128xf32> -> vector<64x128xf32>
    %c0_66 = arith.constant 0 : index
    %c0_67 = arith.constant 0 : index
    %103 = vector.load %arg8[%c0_66, %c0_67] : memref<1x128xf32, #tpu.memory_space<vmem>>, vector<1x128xf32>
    %104 = vector.broadcast %103 : vector<1x128xf32> to vector<64x128xf32>
    %105 = arith.addf %102, %104 : vector<64x128xf32>
    %cst_68 = arith.constant 0.000000e+00 : f32
    %106 = vector.broadcast %cst_68 : f32 to vector<64x128xf32>
    %107 = arith.maximumf %105, %106 : vector<64x128xf32>
    %108 = arith.truncf %107 : vector<64x128xf32> to vector<64x128xbf16>
    %c0_69 = arith.constant 0 : index
    %c0_70 = arith.constant 0 : index
    %109 = vector.load %arg9[%c0_69, %c0_70] : memref<128x128xbf16, #tpu.memory_space<vmem>>, vector<128x128xbf16>
    %cst_71 = arith.constant dense<0.000000e+00> : vector<64x128xf32>
    %110 = tpu.matmul %108, %109, %cst_71 {dimension_numbers = #tpu.dot_dimension_numbers<[1], [0], [0], [1], [0, 0, 1, 1], [], []>} : vector<64x128xbf16>, vector<128x128xbf16>, vector<64x128xf32> -> vector<64x128xf32>
    %c0_72 = arith.constant 0 : index
    %c0_73 = arith.constant 0 : index
    %111 = vector.load %arg10[%c0_72, %c0_73] : memref<1x128xf32, #tpu.memory_space<vmem>>, vector<1x128xf32>
    %112 = vector.broadcast %111 : vector<1x128xf32> to vector<64x128xf32>
    %113 = arith.addf %110, %112 : vector<64x128xf32>
    %c0_74 = arith.constant 0 : index
    %c0_75 = arith.constant 0 : index
    %114 = vector.load %arg11[%c0_74, %c0_75] : memref<64x128xf32, #tpu.memory_space<vmem>>, vector<64x128xf32>
    tpu.vector_store %arg11[%c0_74, %c0_75], %113 {strides = array<i32>} : memref<64x128xf32, #tpu.memory_space<vmem>>, vector<64x128xf32>,
    return
  }
}

</mosaic_0001>

<bundles_post_ra>
// kernel: tpu_custom_call.1
= control target key start
LH: loop header
LB: loop body
LE: loop exit
PB: predicated region body
PF: predicated region fallthrough
CT: control target
= control target key end

     0   :  { %16 = vsyncpa [#allocation6], 0  ;;  %s2662_s0 = inlined_call_operand.hbm [shape: f32[5], index: 0, kind: input, shape index: {}]   ;;  %s2663_s1 = inlined_call_operand.vmem [shape: bf16[64,32], index: 1, kind: input, shape index: {}]   ;;  %s2664_s2 = inlined_call_operand.hbm [shape: bf16[64,64], index: 2, kind: input, shape index: {}]   ;;  %s2665_s3 = inlined_call_operand.hbm [shape: bf16[32,128], index: 3, kind: input, shape index: {}]   ;;  %s2666_s4 = inlined_call_operand.hbm [shape: f32[1,128], index: 4, kind: input, shape index: {}]   ;;  %s2667_s5 = inlined_call_operand.hbm [shape: bf16[4,128,128], index: 5, kind: input, shape index: {}]   ;;  %s2668_s6 = inlined_call_operand.hbm [shape: f32[4,1,128], index: 6, kind: input, shape index: {}]   ;;  %s2669_s7 = inlined_call_operand.hbm [shape: bf16[128,128], index: 7, kind: input, shape index: {}]   ;;  %s2670_s8 = inlined_call_operand.hbm [shape: f32[1,128], index: 8, kind: input, shape index: {}]   ;;  %s2671_s9 = inlined_call_operand.vmem [shape: bf16[128,128], index: 9, kind: input, shape index: {}]   ;;  %s2672_s10 = inlined_call_operand.vmem [shape: f32[1,128], index: 10, kind: input, shape index: {}]   ;;  %s2673_s11 = inlined_call_operand.hbm [shape: f32[64,128], index: 11, kind: output, shape index: {}]  }
   0x1   :  { %17 = vsyncpa [#allocation4], 0 }
   0x2   :  { %18 = vsyncpa [#allocation9], 0 }
   0x3   :  { %19 = vsyncpa [#allocation12], 0 }
   0x4   :  { %20 = vsyncpa [#allocation15], 0 }
   0x5   :  { %21 = vsyncpa [#allocation5], 0  ;;  %s2337_s17 = smov [#allocation8]   ;;  %s2338_s19 = smov [#allocation11]  }
   0x6   :  { %s49_s18 = sshll.u32 %s2337_s17, 4  ;;  %s71_s20 = sshll.u32 %s2338_s19, 4  ;;  %s50_s18 = int_to_ptr.vmem [resolvable:$true] %s49_s18  ;;  %s72_s20 = int_to_ptr.vmem [resolvable:$true] %s71_s20 }
   0x7   :  { %s2165_s21 = scalar_lea.vmem %s50_s18, 256  ;;  %p2170_p1 = scmp.lt.s32.totalorder %s50_s18, %s50_s18 }
   0x8   :  { %p2166_p0 = scmp.ne.s32.totalorder %s50_s18, %s2165_s21  ;;  %p2171_p2 = scmp.lt.s32.totalorder %s2165_s21, %s2165_s21 }
   0xa   :  { %p2172_p3 = por %p2171_p2, %p2170_p1 }
   0xc   :  { %p2173_p4 = pnand %p2172_p3, %p2166_p0 }
   0xe   :  { %2176 = shalt.err (!%p2173_p4)
}
   0xf   :  { %s2339_s22 = smov 64   ;;  %s2340_s23 = smov 4  }
  0x10   :  { %55 = dma.hbm_to_vmem [thread:$0]  %s2665_s3, 256, %s50_s18, [#allocation9], %s2339_s22, %s2339_s22, %s2340_s23  }
  0x11   :  { %s2185_s26 = scalar_lea.vmem %s72_s20, 4096  ;;  %p2190_p6 = scmp.lt.s32.totalorder %s72_s20, %s72_s20 }
  0x12   :  { %p2186_p5 = scmp.ne.s32.totalorder %s72_s20, %s2185_s26  ;;  %p2191_p7 = scmp.lt.s32.totalorder %s2185_s26, %s2185_s26 }
  0x14   :  { %p2192_p8 = por %p2191_p7, %p2190_p6 }
  0x16   :  { %p2193_p9 = pnand %p2192_p8, %p2186_p5 }
  0x18   :  { %2196 = shalt.err (!%p2193_p9)
}
  0x19   :  { %77 = dma.hbm_to_vmem [thread:$0]  %s2667_s5, 4096, %s72_s20, [#allocation12], %s2339_s22, %s2339_s22, %s2340_s23  }
  0x1a   :  { %s2341_s29 = smov [#allocation14]   ;;  %s2342_s12 = smov [#allocation7]  }
  0x1b   :  { %s95_s30 = sshll.u32 %s2341_s29, 4  ;;  %s37_s13 = sshll.u32 %s2342_s12, 4  ;;  %s96_s30 = int_to_ptr.vmem [resolvable:$true] %s95_s30  ;;  %s38_s13 = int_to_ptr.vmem [resolvable:$true] %s37_s13 }
  0x1c   :  { %s2205_s3 = scalar_lea.vmem %s96_s30, 1024  ;;  %p2210_p11 = scmp.lt.s32.totalorder %s96_s30, %s96_s30 }
  0x1d   :  { %p2206_p10 = scmp.ne.s32.totalorder %s96_s30, %s2205_s3  ;;  %p2211_p12 = scmp.lt.s32.totalorder %s2205_s3, %s2205_s3 }
  0x1f   :  { %p2212_p13 = por %p2211_p12, %p2210_p11 }
  0x21   :  { %p2213_p0 = pnand %p2212_p13, %p2206_p10 }
  0x23   :  { %2216 = shalt.err (!%p2213_p0)
}
  0x24   :  { %101 = dma.hbm_to_vmem [thread:$0]  %s2669_s7, 1024, %s96_s30, [#allocation15], %s2339_s22, %s2339_s22, %s2340_s23  }
  0x25   :  { %s2343_s5 = smov [#allocation3]   ;;  %s2233_s18 = scalar_lea.vmem %s38_s13, 512 }
  0x26   :  { %29 = dma.hbm_to_smem %s2662_s0, 16, %s2343_s5, [#allocation6]  }
  0x27   :  { %p2234_p1 = scmp.ne.s32.totalorder %s38_s13, %s2233_s18  ;;  %p2238_p2 = scmp.lt.s32.totalorder %s38_s13, %s38_s13 }
  0x28   :  { %p2239_p3 = scmp.lt.s32.totalorder %s2233_s18, %s2233_s18 }
  0x2a   :  { %p2240_p4 = por %p2239_p3, %p2238_p2 }
  0x2c   :  { %p2241_p5 = pnand %p2240_p4, %p2234_p1 }
  0x2e   :  { %2244 = shalt.err (!%p2241_p5)
}
  0x2f   :  { %43 = dma.hbm_to_vmem [thread:$0]  %s2664_s2, 512, %s38_s13, [#allocation4], %s2339_s22, %s2339_s22, %s2340_s23  }
  0x30   :  { %s2344_s7 = smov [#allocation10]   ;;  %s2345_s24 = smov [#allocation13]  }
  0x31   :  { %s62_s21 = sshll.u32 %s2344_s7, 4  ;;  %s83_s0 = sshll.u32 %s2345_s24, 4  ;;  %s63_s21 = int_to_ptr.vmem [resolvable:$true] %s62_s21  ;;  %s84_s0 = int_to_ptr.vmem [resolvable:$true] %s83_s0 }
  0x32   :  { %s2253_s25 = scalar_lea.vmem %s63_s21, 16  ;;  %s2257_s26 = scalar_lea.vmem %s63_s21, 32 }
  0x33   :  { %p2254_p6 = scmp.ne.s32.totalorder %s63_s21, %s2253_s25  ;;  %p2258_p7 = scmp.lt.s32.totalorder %s63_s21, %s63_s21 }
  0x34   :  { %p2259_p8 = scmp.lt.s32.totalorder %s2257_s26, %s2253_s25 }
  0x36   :  { %p2260_p9 = por %p2259_p8, %p2258_p7 }
  0x38   :  { %p2261_p10 = pnand %p2260_p9, %p2254_p6 }
  0x3a   :  { %2264 = shalt.err (!%p2261_p10)
}
  0x3b   :  { %65 = dma.hbm_to_vmem [thread:$0]  %s2666_s4, 16, %s63_s21, [#allocation9]  }
  0x3c   :  { %s2273_s29 = scalar_lea.vmem %s84_s0, 64  ;;  %p2278_p12 = scmp.lt.s32.totalorder %s84_s0, %s84_s0 }
  0x3d   :  { %p2274_p11 = scmp.ne.s32.totalorder %s84_s0, %s2273_s29  ;;  %p2279_p13 = scmp.lt.s32.totalorder %s2273_s29, %s2273_s29 }
  0x3f   :  { %p2280_p0 = por %p2279_p13, %p2278_p12 }
  0x41   :  { %p2281_p1 = pnand %p2280_p0, %p2274_p11 }
  0x43   :  { %2284 = shalt.err (!%p2281_p1)
}
  0x44   :  { %s2346_s2 = smov 16   ;;  %s2347_s22 = smov 1  }
  0x45   :  { %89 = dma.hbm_to_vmem [thread:$0]  %s2668_s6, 64, %s84_s0, [#allocation12], %s2346_s2, %s2346_s2, %s2347_s22  }
  0x46   :  { %s2348_s12 = smov [#allocation16]  }
  0x47   :  { %s108_s13 = sshll.u32 %s2348_s12, 4  ;;  %s109_s13 = int_to_ptr.vmem [resolvable:$true] %s108_s13 }
  0x48   :  { %s2293_s3 = scalar_lea.vmem %s109_s13, 16  ;;  %s2297_s4 = scalar_lea.vmem %s109_s13, 32 }
  0x49   :  { %p2294_p2 = scmp.ne.s32.totalorder %s109_s13, %s2293_s3  ;;  %p2298_p3 = scmp.lt.s32.totalorder %s109_s13, %s109_s13 }
  0x4a   :  { %p2299_p4 = scmp.lt.s32.totalorder %s2297_s4, %s2293_s3 }
  0x4c   :  { %p2300_p5 = por %p2299_p4, %p2298_p3 }
  0x4e   :  { %p2301_p6 = pnand %p2300_p5, %p2294_p2 }
  0x50   :  { %2304 = shalt.err (!%p2301_p6)
}
  0x51   :  { %111 = dma.hbm_to_vmem [thread:$0]  %s2670_s8, 16, %s109_s13, [#allocation15]  }
  0x52   :  { %2325 = dma.done.wait [#allocation6], 16  }
  0x53   :  { %2326 = vsyncadd [#allocation6], 4294967280 }
  0x54   :  { %2327 = dma.done.wait [#allocation4], 512  }
  0x55   :  { %2328 = vsyncadd [#allocation4], 4294966784 }
  0x56   :  { %2329 = dma.done.wait [#allocation9], 272  }
  0x57   :  { %2330 = vsyncadd [#allocation9], 4294967024 }
  0x58   :  { %2331 = dma.done.wait [#allocation12], 4160  }
  0x59   :  { %2332 = vsyncadd [#allocation12], 4294963136 }
  0x5a   :  { %2333 = dma.done.wait [#allocation15], 1040  }
  0x5b   :  { %2334 = vsyncadd [#allocation15], 4294966256 }
  0x5c   :  { %140 = sfence }
  0x5d   :  { %v2099_v0 = vld [vmem:[#allocation8 + $0x8] sm:$0xff]   ;;  %v2100_v1 = vld [vmem:[#allocation8] sm:$0xff]   ;;  %vm193_vm0 = vcmask 261120   ;;  %v2103_v4 = vld [vmem:[%s2663_s1 + $0x10] sm:$0xff]   ;;  %vm469_vm1 = vcmask 523264   ;;  %s1693_s7 = sld [smem:[#allocation3 + $0x1]] }
  0x5e   :  { %1864 = vmatprep.subr.bf16.mxu0 %v2099_v0  ;;  %v2101_v2 = vld [vmem:[%s2663_s1] sm:$0xff]   ;;  %v2102_v3 = vld [vmem:[%s2663_s1 + $0x8] sm:$0xff]   ;;  %v2104_v8 = vld [vmem:[%s2663_s1 + $0x18] sm:$0xff]   ;;  %s295_s1 = sld [smem:[#allocation3]]  ;;  %s2349_s8 = smov [#allocation17]  }
  0x5f   :  { %1865 = vmatpush3.bf16.msra.mxu0 %v2099_v0  ;;  %1868 = vmatprep.mubr.msk.bf16.mxu0 %vm193_vm0, %v2101_v2  ;;  %v2105_v5 = vld [vmem:[#allocation11 + $0x38] sm:$0xff]   ;;  %v2106_v6 = vld [vmem:[#allocation11 + $0x30] sm:$0xff]   ;;  %v2107_v7 = vld [vmem:[#allocation11 + $0x28] sm:$0xff]   ;;  %s1707_s21 = sld [smem:[#allocation3 + $0x2]] }
  0x60   :  { %1866 = vmatprep.subr.bf16.mxu0 %v2100_v1  ;;  %1876 = vmatprep.subr.bf16.mxu1 %v2105_v5  ;;  %v2108_v9 = vld [vmem:[#allocation11 + $0x20] sm:$0xff]   ;;  %v2109_v10 = vld [vmem:[#allocation11 + $0x18] sm:$0xff]   ;;  %v2110_v11 = vld [vmem:[#allocation11 + $0x10] sm:$0xff]   ;;  %s1721_s24 = sld [smem:[#allocation3 + $0x3]] }
  0x61   :  { %1877 = vmatpush3.bf16.msra.mxu1 %v2105_v5  ;;  %v2111_v12 = vld [vmem:[#allocation11 + $0x8] sm:$0xff]   ;;  %v2112_v13 = vld [vmem:[#allocation11] sm:$0xff]   ;;  %v1665_v16 = vld [vmem:[#allocation10] ss:$0 sm:$0xff]  ;;  %s1735_s12 = sld [smem:[#allocation3 + $0x4]] }
  0x62   :  { %1878 = vmatprep.subr.bf16.mxu1 %v2106_v6  ;;  %v2488_v44 = vld [vmem:[#allocation7] sm:$0xff]   ;;  %v2117_v57 = vld [vmem:[#allocation11 + $0x78] sm:$0xff]   ;;  %v2502_v62 = vld [vmem:[#allocation7 + $0x18] sm:$0xff]  }
  0x63   :  { %1867 = vmatpush3.bf16.msra.mxu0 %v2100_v1  ;;  %v2494_v58 = vld [vmem:[#allocation7 + $0x8] sm:$0xff]   ;;  %v2496_v59 = vld [vmem:[#allocation7 + $0x10] sm:$0xff]   ;;  %v2119_v61 = vld [vmem:[#allocation11 + $0x68] sm:$0xff]  }
  0x64   :  { %v296_v22 = vstv %s295_s1  ;;  %v2118_v60 = vld [vmem:[#allocation11 + $0x70] sm:$0xff]   ;;  %v2120_v63 = vld [vmem:[#allocation11 + $0x60] sm:$0xff]   ;;  %v2121_v0 = vld [vmem:[#allocation11 + $0x58] sm:$0xff]  }
  0x65   :  { %1879 = vmatpush3.bf16.msra.mxu1 %v2106_v6  ;;  %v2122_v1 = vld [vmem:[#allocation11 + $0x50] sm:$0xff]   ;;  %v2123_v2 = vld [vmem:[#allocation11 + $0x48] sm:$0xff]  }
  0x66   :  { %1869 = vmatmul.mubr.msk.bf16.vlgmr.msra.gmra.mxu0 %vm193_vm0, %v2102_v3  ;;  %1880 = vmatprep.subr.bf16.mxu1 %v2107_v7  ;;  %v2124_v3 = vld [vmem:[#allocation11 + $0x40] sm:$0xff]  }
  0x67   :  { %1872 = vmatprep.mubr.msk.bf16.mxu0 %vm193_vm0, %v2103_v4  ;;  %v1684_v4 = vld [vmem:[#allocation13] ss:$0 sm:$0xff] }
  0x69   :  { %1881 = vmatpush3.bf16.msra.mxu1 %v2107_v7 }
  0x6a   :  { %1882 = vmatprep.subr.bf16.mxu1 %v2108_v9 }
  0x6d   :  { %1883 = vmatpush3.bf16.msra.mxu1 %v2108_v9 }
  0x6e   :  { %1873 = vmatmul.mubr.msk.bf16.gmra.mxu0 %vm193_vm0, %v2104_v8  ;;  %1884 = vmatprep.subr.bf16.mxu1 %v2109_v10 }
  0x6f   :  { %1908 = vmatprep.mubr.msk.bf16.mxu0 %vm469_vm1, %v2488_v44 }
  0x71   :  { %1885 = vmatpush3.bf16.msra.mxu1 %v2109_v10 }
  0x72   :  { %1886 = vmatprep.subr.bf16.mxu1 %v2110_v11 }
  0x75   :  { %1887 = vmatpush3.bf16.msra.mxu1 %v2110_v11 }
  0x76   :  { %1888 = vmatprep.subr.bf16.mxu1 %v2111_v12 }
  0x79   :  { %1889 = vmatpush3.bf16.msra.mxu1 %v2111_v12 }
  0x7a   :  { %1890 = vmatprep.subr.bf16.mxu1 %v2112_v13 }
  0x7d   :  { %1891 = vmatpush3.bf16.msra.mxu1 %v2112_v13 }
 0x126   :  { %v1870_v14 = vpop.f32.mrf.mxu0 }
 0x127   :  { %v2468_v20 = vadd.f32 %v1870_v14, %v1665_v16 }
 0x128   :  { %v240_v15 = vpop.f32.mrf.mxu0 }
 0x129   :  { %v2464_v18 = vadd.f32 %v1665_v16, %v240_v15  ;;  %v299_v28 = vmul.f32 %v296_v22, %v2468_v20 }
 0x12a   :  { %v1871_v17 = vpop.f32.mrf.mxu0 }
 0x12b   :  { %v2466_v19 = vadd.f32 %v1871_v17, %v1665_v16  ;;  %v297_v26 = vmul.f32 %v296_v22, %v2464_v18 }
 0x12c   :  { %v243_v21 = vpop.f32.mrf.mxu0 }
 0x12d   :  { %v2470_v23 = vadd.f32 %v1665_v16, %v243_v21  ;;  %v300_v24 = vmul.f32 %v296_v22, %v2466_v19 }
 0x12e   :  { %v1874_v25 = vpop.f32.mrf.mxu0 }
 0x12f   :  { %v298_v27 = vmul.f32 %v296_v22, %v2470_v23  ;;  %v306_v32 = vpack.c.bf16 %v300_v24, %v299_v28  ;;  %v2480_v35 = vadd.f32 %v1874_v25, %v1665_v16 }
 0x130   :  { %v256_v29 = vpop.f32.mrf.mxu0 }
 0x131   :  { %v305_v30 = vpack.c.bf16 %v298_v27, %v297_v26  ;;  %v2476_v33 = vadd.f32 %v1665_v16, %v256_v29  ;;  %v303_v41 = vmul.f32 %v296_v22, %v2480_v35  ;;  %v580_v27 = vstv %s1693_s7 }
 0x132   :  { %v1875_v31 = vpop.f32.mrf.mxu0 }
 0x133   :  { %v2478_v34 = vadd.f32 %v1875_v31, %v1665_v16  ;;  %1892 = vmatprep.mubr.bf16.mxu1 %v305_v30  ;;  %v301_v39 = vmul.f32 %v296_v22, %v2476_v33 }
 0x134   :  { %v259_v36 = vpop.f32.mrf.mxu0  ;;  %1893 = vmatmul.mubr.bf16.vlgmr.msra.gmra.mxu1 %v306_v32 }
 0x135   :  { %v2482_v37 = vadd.f32 %v1665_v16, %v259_v36  ;;  %v304_v38 = vmul.f32 %v296_v22, %v2478_v34 }
 0x137   :  { %v302_v40 = vmul.f32 %v296_v22, %v2482_v37  ;;  %v308_v43 = vpack.c.bf16 %v304_v38, %v303_v41 }
 0x139   :  { %v307_v42 = vpack.c.bf16 %v302_v40, %v301_v39 }
 0x13b   :  { %1896 = vmatprep.mubr.bf16.mxu1 %v307_v42 }
 0x13c   :  { %1897 = vmatmul.mubr.bf16.gmra.mxu1 %v308_v43 }
 0x13d   :  { %1948 = vmatprep.mubr.msk.bf16.mxu1 %vm469_vm1, %v2488_v44 }
 0x1f4   :  { %v1894_v45 = vpop.f32.mrf.mxu1 }
 0x1f6   :  { %v407_v46 = vpop.f32.mrf.mxu1 }
 0x1f8   :  { %v1895_v47 = vpop.f32.mrf.mxu1 }
 0x1f9   :  { %v439_v55 = vpack.c.bf16 %v1895_v47, %v1894_v45 }
 0x1fa   :  { %v410_v48 = vpop.f32.mrf.mxu1 }
 0x1fb   :  { %v438_v56 = vpack.c.bf16 %v410_v48, %v407_v46 }
 0x1fc   :  { %v1898_v49 = vpop.f32.mrf.mxu1 }
 0x1fe   :  { %v423_v50 = vpop.f32.mrf.mxu1 }
 0x200   :  { %v1899_v51 = vpop.f32.mrf.mxu1 }
 0x201   :  { %v441_v52 = vpack.c.bf16 %v1899_v51, %v1898_v49 }
 0x202   :  { %v426_v53 = vpop.f32.mrf.mxu1 }
 0x203   :  { %v440_v54 = vpack.c.bf16 %v426_v53, %v423_v50  ;;  %1900 = vmatprep.subr.bf16.mxu0 %v441_v52 }
 0x204   :  { %1901 = vmatpush3.bf16.msra.mxu0 %v441_v52 }
 0x205   :  { %1902 = vmatprep.subr.bf16.mxu0 %v440_v54 }
 0x208   :  { %1903 = vmatpush3.bf16.msra.mxu0 %v440_v54 }
 0x209   :  { %1904 = vmatprep.subr.bf16.mxu0 %v439_v55 }
 0x20c   :  { %1905 = vmatpush3.bf16.msra.mxu0 %v439_v55 }
 0x20d   :  { %1906 = vmatprep.subr.bf16.mxu0 %v438_v56 }
 0x210   :  { %1907 = vmatpush3.bf16.msra.mxu0 %v438_v56 }
 0x211   :  { %1916 = vmatprep.subr.bf16.mxu0 %v2117_v57 }
 0x213   :  { %1909 = vmatmul.mubr.msk.bf16.vlgmr.msra.gmra.mxu0 %vm469_vm1, %v2494_v58 }
 0x214   :  { %1912 = vmatprep.mubr.msk.bf16.mxu0 %vm469_vm1, %v2496_v59  ;;  %1917 = vmatpush3.bf16.msra.mxu0 %v2117_v57 }
 0x215   :  { %1918 = vmatprep.subr.bf16.mxu0 %v2118_v60 }
 0x218   :  { %1919 = vmatpush3.bf16.msra.mxu0 %v2118_v60 }
 0x219   :  { %1920 = vmatprep.subr.bf16.mxu0 %v2119_v61 }
 0x21b   :  { %1913 = vmatmul.mubr.msk.bf16.gmra.mxu0 %vm469_vm1, %v2502_v62 }
 0x21c   :  { %1921 = vmatpush3.bf16.msra.mxu0 %v2119_v61 }
 0x21d   :  { %1922 = vmatprep.subr.bf16.mxu0 %v2120_v63 }
 0x220   :  { %1923 = vmatpush3.bf16.msra.mxu0 %v2120_v63 }
 0x221   :  { %1924 = vmatprep.subr.bf16.mxu0 %v2121_v0 }
 0x224   :  { %1925 = vmatpush3.bf16.msra.mxu0 %v2121_v0 }
 0x225   :  { %1926 = vmatprep.subr.bf16.mxu0 %v2122_v1 }
 0x228   :  { %1927 = vmatpush3.bf16.msra.mxu0 %v2122_v1 }
 0x229   :  { %1928 = vmatprep.subr.bf16.mxu0 %v2123_v2 }
 0x22c   :  { %1929 = vmatpush3.bf16.msra.mxu0 %v2123_v2  ;;  %v2125_v2 = vld [vmem:[#allocation11 + $0xb8] sm:$0xff]  }
 0x22d   :  { %1930 = vmatprep.subr.bf16.mxu0 %v2124_v3 }
 0x230   :  { %1931 = vmatpush3.bf16.msra.mxu0 %v2124_v3  ;;  %v2126_v3 = vld [vmem:[#allocation11 + $0xb0] sm:$0xff]  }
 0x2d3   :  { %v1910_v5 = vpop.f32.mrf.mxu0 }
 0x2d4   :  { %v525_v6 = vadd.f32 %v1910_v5, %v1684_v4  ;;  %v2128_v5 = vld [vmem:[#allocation11 + $0xa0] sm:$0xff]  }
 0x2d5   :  { %v516_v7 = vpop.f32.mrf.mxu0 }
 0x2d6   :  { %v517_v8 = vadd.f32 %v1684_v4, %v516_v7  ;;  %v549_v12 = vmax.f32 %v525_v6, 0.0  ;;  %v2129_v6 = vld [vmem:[#allocation11 + $0x98] sm:$0xff]   ;;  %v2130_v7 = vld [vmem:[#allocation11 + $0x90] sm:$0xff]  }
 0x2d7   :  { %v1911_v9 = vpop.f32.mrf.mxu0 }
 0x2d8   :  { %v547_v10 = vmax.f32 %v517_v8, 0.0  ;;  %v528_v11 = vadd.f32 %v1911_v9, %v1684_v4  ;;  %v2513_v24 = vadd.f32 %v549_v12, %v2468_v20  ;;  %v2131_v8 = vld [vmem:[#allocation11 + $0x88] sm:$0xff]   ;;  %v2132_v9 = vld [vmem:[#allocation11 + $0x80] sm:$0xff]  }
 0x2d9   :  { %v519_v13 = vpop.f32.mrf.mxu0 }
 0x2da   :  { %v550_v14 = vmax.f32 %v528_v11, 0.0  ;;  %v520_v15 = vadd.f32 %v1684_v4, %v519_v13  ;;  %v2507_v17 = vadd.f32 %v547_v10, %v2464_v18  ;;  %v583_v36 = vmul.f32 %v580_v27, %v2513_v24  ;;  %v1702_v10 = vld [vmem:[#allocation13 + $0x1] ss:$0 sm:$0xff] }
 0x2db   :  { %v1914_v16 = vpop.f32.mrf.mxu0 }
 0x2dc   :  { %v2510_v21 = vadd.f32 %v550_v14, %v2466_v19  ;;  %v548_v22 = vmax.f32 %v520_v15, 0.0  ;;  %v541_v25 = vadd.f32 %v1914_v16, %v1684_v4  ;;  %v581_v18 = vmul.f32 %v580_v27, %v2507_v17 }
 0x2dd   :  { %v532_v26 = vpop.f32.mrf.mxu0 }
 0x2de   :  { %v2516_v28 = vadd.f32 %v548_v22, %v2470_v23  ;;  %v533_v29 = vadd.f32 %v1684_v4, %v532_v26  ;;  %v584_v30 = vmul.f32 %v580_v27, %v2510_v21  ;;  %v553_v38 = vmax.f32 %v541_v25, 0.0 }
 0x2df   :  { %v1915_v31 = vpop.f32.mrf.mxu0 }
 0x2e0   :  { %v582_v32 = vmul.f32 %v580_v27, %v2516_v28  ;;  %v551_v19 = vmax.f32 %v533_v29, 0.0  ;;  %v544_v20 = vadd.f32 %v1915_v31, %v1684_v4  ;;  %v590_v42 = vpack.c.bf16 %v584_v30, %v583_v36 }
 0x2e1   :  { %v535_v39 = vpop.f32.mrf.mxu0  ;;  %v2526_v46 = vadd.f32 %v553_v38, %v2480_v35 }
 0x2e2   :  { %v536_v40 = vadd.f32 %v1684_v4, %v535_v39  ;;  %v589_v41 = vpack.c.bf16 %v582_v32, %v581_v18  ;;  %v554_v43 = vmax.f32 %v544_v20, 0.0  ;;  %v2523_v23 = vadd.f32 %v551_v19, %v2476_v33  ;;  %v2127_v4 = vld [vmem:[#allocation11 + $0xa8] sm:$0xff]  }
 0x2e3   :  { %v587_v33 = vmul.f32 %v580_v27, %v2526_v46  ;;  %v833_v20 = vstv %s1707_s21 }
 0x2e4   :  { %v552_v45 = vmax.f32 %v536_v40, 0.0  ;;  %1932 = vmatprep.mubr.bf16.mxu0 %v589_v41  ;;  %v2529_v47 = vadd.f32 %v554_v43, %v2478_v34  ;;  %v585_v50 = vmul.f32 %v580_v27, %v2523_v23 }
 0x2e5   :  { %1933 = vmatmul.mubr.bf16.vlgmr.msra.gmra.mxu0 %v590_v42 }
 0x2e6   :  { %v2532_v48 = vadd.f32 %v552_v45, %v2482_v37  ;;  %v588_v49 = vmul.f32 %v580_v27, %v2529_v47 }
 0x2e8   :  { %v586_v51 = vmul.f32 %v580_v27, %v2532_v48  ;;  %v592_v53 = vpack.c.bf16 %v588_v49, %v587_v33 }
 0x2ea   :  { %v591_v52 = vpack.c.bf16 %v586_v51, %v585_v50 }
 0x2ec   :  { %1936 = vmatprep.mubr.bf16.mxu0 %v591_v52 }
 0x2ed   :  { %1937 = vmatmul.mubr.bf16.gmra.mxu0 %v592_v53 }
 0x2ee   :  { %1988 = vmatprep.mubr.msk.bf16.mxu0 %vm469_vm1, %v2488_v44 }
 0x3a5   :  { %v1934_v34 = vpop.f32.mrf.mxu0 }
 0x3a7   :  { %v692_v35 = vpop.f32.mrf.mxu0 }
 0x3a9   :  { %v1935_v54 = vpop.f32.mrf.mxu0 }
 0x3aa   :  { %v724_v0 = vpack.c.bf16 %v1935_v54, %v1934_v34 }
 0x3ab   :  { %v695_v37 = vpop.f32.mrf.mxu0 }
 0x3ac   :  { %v723_v1 = vpack.c.bf16 %v695_v37, %v692_v35 }
 0x3ad   :  { %v1938_v55 = vpop.f32.mrf.mxu0 }
 0x3af   :  { %v708_v56 = vpop.f32.mrf.mxu0 }
 0x3b1   :  { %v1939_v57 = vpop.f32.mrf.mxu0 }
 0x3b2   :  { %v726_v60 = vpack.c.bf16 %v1939_v57, %v1938_v55 }
 0x3b3   :  { %v711_v61 = vpop.f32.mrf.mxu0 }
 0x3b4   :  { %v725_v63 = vpack.c.bf16 %v711_v61, %v708_v56  ;;  %1940 = vmatprep.subr.bf16.mxu1 %v726_v60 }
 0x3b5   :  { %1941 = vmatpush3.bf16.msra.mxu1 %v726_v60 }
 0x3b6   :  { %1942 = vmatprep.subr.bf16.mxu1 %v725_v63 }
 0x3b9   :  { %1943 = vmatpush3.bf16.msra.mxu1 %v725_v63 }
 0x3ba   :  { %1944 = vmatprep.subr.bf16.mxu1 %v724_v0 }
 0x3bd   :  { %1945 = vmatpush3.bf16.msra.mxu1 %v724_v0 }
 0x3be   :  { %1946 = vmatprep.subr.bf16.mxu1 %v723_v1 }
 0x3c1   :  { %1947 = vmatpush3.bf16.msra.mxu1 %v723_v1 }
 0x3c2   :  { %1956 = vmatprep.subr.bf16.mxu1 %v2125_v2 }
 0x3c4   :  { %1949 = vmatmul.mubr.msk.bf16.vlgmr.msra.gmra.mxu1 %vm469_vm1, %v2494_v58 }
 0x3c5   :  { %1952 = vmatprep.mubr.msk.bf16.mxu1 %vm469_vm1, %v2496_v59  ;;  %1957 = vmatpush3.bf16.msra.mxu1 %v2125_v2 }
 0x3c6   :  { %1958 = vmatprep.subr.bf16.mxu1 %v2126_v3 }
 0x3c9   :  { %1959 = vmatpush3.bf16.msra.mxu1 %v2126_v3 }
 0x3ca   :  { %1960 = vmatprep.subr.bf16.mxu1 %v2127_v4 }
 0x3cc   :  { %1953 = vmatmul.mubr.msk.bf16.gmra.mxu1 %vm469_vm1, %v2502_v62 }
 0x3cd   :  { %1961 = vmatpush3.bf16.msra.mxu1 %v2127_v4 }
 0x3ce   :  { %1962 = vmatprep.subr.bf16.mxu1 %v2128_v5 }
 0x3d1   :  { %1963 = vmatpush3.bf16.msra.mxu1 %v2128_v5 }
 0x3d2   :  { %1964 = vmatprep.subr.bf16.mxu1 %v2129_v6 }
 0x3d5   :  { %1965 = vmatpush3.bf16.msra.mxu1 %v2129_v6 }
 0x3d6   :  { %1966 = vmatprep.subr.bf16.mxu1 %v2130_v7 }
 0x3d9   :  { %1967 = vmatpush3.bf16.msra.mxu1 %v2130_v7 }
 0x3da   :  { %1968 = vmatprep.subr.bf16.mxu1 %v2131_v8 }
 0x3dd   :  { %1969 = vmatpush3.bf16.msra.mxu1 %v2131_v8  ;;  %v2134_v8 = vld [vmem:[#allocation11 + $0xf0] sm:$0xff]  }
 0x3de   :  { %1970 = vmatprep.subr.bf16.mxu1 %v2132_v9 }
 0x3e1   :  { %1971 = vmatpush3.bf16.msra.mxu1 %v2132_v9  ;;  %v2135_v9 = vld [vmem:[#allocation11 + $0xe8] sm:$0xff]  }
 0x484   :  { %v1950_v11 = vpop.f32.mrf.mxu1 }
 0x485   :  { %v778_v12 = vadd.f32 %v1950_v11, %v1702_v10  ;;  %v2137_v11 = vld [vmem:[#allocation11 + $0xd8] sm:$0xff]  }
 0x486   :  { %v769_v13 = vpop.f32.mrf.mxu1 }
 0x487   :  { %v770_v14 = vadd.f32 %v1702_v10, %v769_v13  ;;  %v802_v25 = vmax.f32 %v778_v12, 0.0  ;;  %v2138_v12 = vld [vmem:[#allocation11 + $0xd0] sm:$0xff]   ;;  %v2139_v13 = vld [vmem:[#allocation11 + $0xc8] sm:$0xff]  }
 0x488   :  { %v1951_v15 = vpop.f32.mrf.mxu1 }
 0x489   :  { %v800_v16 = vmax.f32 %v770_v14, 0.0  ;;  %v781_v22 = vadd.f32 %v1951_v15, %v1702_v10  ;;  %v2553_v19 = vadd.f32 %v802_v25, %v2513_v24  ;;  %v2140_v14 = vld [vmem:[#allocation11 + $0xc0] sm:$0xff]  }
 0x48a   :  { %v772_v26 = vpop.f32.mrf.mxu1  ;;  %v1716_v15 = vld [vmem:[#allocation13 + $0x2] ss:$0 sm:$0xff] }
 0x48b   :  { %v803_v27 = vmax.f32 %v781_v22, 0.0  ;;  %v773_v29 = vadd.f32 %v1702_v10, %v772_v26  ;;  %v2547_v31 = vadd.f32 %v800_v16, %v2507_v17  ;;  %v836_v45 = vmul.f32 %v833_v20, %v2553_v19 }
 0x48c   :  { %v1954_v30 = vpop.f32.mrf.mxu1 }
 0x48d   :  { %v2550_v18 = vadd.f32 %v803_v27, %v2510_v21  ;;  %v801_v32 = vmax.f32 %v773_v29, 0.0  ;;  %v794_v36 = vadd.f32 %v1954_v30, %v1702_v10  ;;  %v834_v17 = vmul.f32 %v833_v20, %v2547_v31 }
 0x48e   :  { %v785_v38 = vpop.f32.mrf.mxu1 }
 0x48f   :  { %v2556_v39 = vadd.f32 %v801_v32, %v2516_v28  ;;  %v786_v40 = vadd.f32 %v1702_v10, %v785_v38  ;;  %v837_v41 = vmul.f32 %v833_v20, %v2550_v18  ;;  %v806_v49 = vmax.f32 %v794_v36, 0.0 }
 0x490   :  { %v1955_v42 = vpop.f32.mrf.mxu1 }
 0x491   :  { %v835_v43 = vmul.f32 %v833_v20, %v2556_v39  ;;  %v804_v21 = vmax.f32 %v786_v40, 0.0  ;;  %v797_v24 = vadd.f32 %v1955_v42, %v1702_v10  ;;  %v843_v52 = vpack.c.bf16 %v837_v41, %v836_v45 }
 0x492   :  { %v788_v50 = vpop.f32.mrf.mxu1  ;;  %v2566_v35 = vadd.f32 %v806_v49, %v2526_v46  ;;  %v1086_v49 = vstv %s1721_s24 }
 0x493   :  { %v789_v51 = vadd.f32 %v1702_v10, %v788_v50  ;;  %v842_v33 = vpack.c.bf16 %v835_v43, %v834_v17  ;;  %v807_v53 = vmax.f32 %v797_v24, 0.0  ;;  %v2563_v28 = vadd.f32 %v804_v21, %v2523_v23  ;;  %v2136_v10 = vld [vmem:[#allocation11 + $0xe0] sm:$0xff]  }
 0x494   :  { %v840_v23 = vmul.f32 %v833_v20, %v2566_v35 }
 0x495   :  { %v805_v34 = vmax.f32 %v789_v51, 0.0  ;;  %1972 = vmatprep.mubr.bf16.mxu1 %v842_v33  ;;  %v2569_v54 = vadd.f32 %v807_v53, %v2529_v47  ;;  %v838_v56 = vmul.f32 %v833_v20, %v2563_v28 }
 0x496   :  { %1973 = vmatmul.mubr.bf16.vlgmr.msra.gmra.mxu1 %v843_v52 }
 0x497   :  { %v2572_v37 = vadd.f32 %v805_v34, %v2532_v48  ;;  %v841_v55 = vmul.f32 %v833_v20, %v2569_v54 }
 0x499   :  { %v839_v57 = vmul.f32 %v833_v20, %v2572_v37  ;;  %v845_v61 = vpack.c.bf16 %v841_v55, %v840_v23 }
 0x49b   :  { %v844_v60 = vpack.c.bf16 %v839_v57, %v838_v56 }
 0x49d   :  { %1976 = vmatprep.mubr.bf16.mxu1 %v844_v60 }
 0x49e   :  { %1977 = vmatmul.mubr.bf16.gmra.mxu1 %v845_v61 }
 0x49f   :  { %2028 = vmatprep.mubr.msk.bf16.mxu1 %vm469_vm1, %v2488_v44  ;;  %v2133_v44 = vld [vmem:[#allocation11 + $0xf8] sm:$0xff]  }
 0x556   :  { %v1974_v46 = vpop.f32.mrf.mxu1 }
 0x558   :  { %v945_v47 = vpop.f32.mrf.mxu1 }
 0x55a   :  { %v1975_v63 = vpop.f32.mrf.mxu1 }
 0x55b   :  { %v977_v6 = vpack.c.bf16 %v1975_v63, %v1974_v46 }
 0x55c   :  { %v948_v48 = vpop.f32.mrf.mxu1 }
 0x55d   :  { %v976_v7 = vpack.c.bf16 %v948_v48, %v945_v47 }
 0x55e   :  { %v1978_v0 = vpop.f32.mrf.mxu1 }
 0x560   :  { %v961_v1 = vpop.f32.mrf.mxu1 }
 0x562   :  { %v1979_v2 = vpop.f32.mrf.mxu1 }
 0x563   :  { %v979_v3 = vpack.c.bf16 %v1979_v2, %v1978_v0 }
 0x564   :  { %v964_v4 = vpop.f32.mrf.mxu1 }
 0x565   :  { %v978_v5 = vpack.c.bf16 %v964_v4, %v961_v1  ;;  %1980 = vmatprep.subr.bf16.mxu0 %v979_v3 }
 0x566   :  { %1981 = vmatpush3.bf16.msra.mxu0 %v979_v3 }
 0x567   :  { %1982 = vmatprep.subr.bf16.mxu0 %v978_v5 }
 0x56a   :  { %1983 = vmatpush3.bf16.msra.mxu0 %v978_v5 }
 0x56b   :  { %1984 = vmatprep.subr.bf16.mxu0 %v977_v6 }
 0x56e   :  { %1985 = vmatpush3.bf16.msra.mxu0 %v977_v6 }
 0x56f   :  { %1986 = vmatprep.subr.bf16.mxu0 %v976_v7 }
 0x572   :  { %1987 = vmatpush3.bf16.msra.mxu0 %v976_v7 }
 0x573   :  { %1996 = vmatprep.subr.bf16.mxu0 %v2133_v44 }
 0x575   :  { %1989 = vmatmul.mubr.msk.bf16.vlgmr.msra.gmra.mxu0 %vm469_vm1, %v2494_v58 }
 0x576   :  { %1992 = vmatprep.mubr.msk.bf16.mxu0 %vm469_vm1, %v2496_v59  ;;  %1997 = vmatpush3.bf16.msra.mxu0 %v2133_v44 }
 0x577   :  { %1998 = vmatprep.subr.bf16.mxu0 %v2134_v8 }
 0x57a   :  { %1999 = vmatpush3.bf16.msra.mxu0 %v2134_v8 }
 0x57b   :  { %2000 = vmatprep.subr.bf16.mxu0 %v2135_v9 }
 0x57d   :  { %1993 = vmatmul.mubr.msk.bf16.gmra.mxu0 %vm469_vm1, %v2502_v62 }
 0x57e   :  { %2001 = vmatpush3.bf16.msra.mxu0 %v2135_v9 }
 0x57f   :  { %2002 = vmatprep.subr.bf16.mxu0 %v2136_v10 }
 0x582   :  { %2003 = vmatpush3.bf16.msra.mxu0 %v2136_v10 }
 0x583   :  { %2004 = vmatprep.subr.bf16.mxu0 %v2137_v11 }
 0x586   :  { %2005 = vmatpush3.bf16.msra.mxu0 %v2137_v11 }
 0x587   :  { %2006 = vmatprep.subr.bf16.mxu0 %v2138_v12 }
 0x58a   :  { %2007 = vmatpush3.bf16.msra.mxu0 %v2138_v12  ;;  %v2141_v12 = vld [vmem:[#allocation14 + $0x38] sm:$0xff]  }
 0x58b   :  { %2008 = vmatprep.subr.bf16.mxu0 %v2139_v13 }
 0x58e   :  { %2009 = vmatpush3.bf16.msra.mxu0 %v2139_v13  ;;  %v2142_v13 = vld [vmem:[#allocation14 + $0x30] sm:$0xff]  }
 0x58f   :  { %2010 = vmatprep.subr.bf16.mxu0 %v2140_v14 }
 0x592   :  { %2011 = vmatpush3.bf16.msra.mxu0 %v2140_v14  ;;  %v2143_v14 = vld [vmem:[#allocation14 + $0x28] sm:$0xff]  }
 0x635   :  { %v1990_v16 = vpop.f32.mrf.mxu0 }
 0x636   :  { %v1031_v22 = vadd.f32 %v1990_v16, %v1716_v15  ;;  %v2145_v16 = vld [vmem:[#allocation14 + $0x18] sm:$0xff]  }
 0x637   :  { %v1022_v25 = vpop.f32.mrf.mxu0 }
 0x638   :  { %v1023_v26 = vadd.f32 %v1716_v15, %v1022_v25  ;;  %v1055_v32 = vmax.f32 %v1031_v22, 0.0  ;;  %v2146_v22 = vld [vmem:[#allocation14 + $0x10] sm:$0xff]   ;;  %v2149_v25 = vld [vmem:[%s2671_s9 + $0x38] sm:$0xff]  }
 0x639   :  { %v1991_v27 = vpop.f32.mrf.mxu0  ;;  %2060 = vmatprep.subr.bf16.mxu0 %v2149_v25 }
 0x63a   :  { %v1053_v29 = vmax.f32 %v1023_v26, 0.0  ;;  %v1034_v30 = vadd.f32 %v1991_v27, %v1716_v15  ;;  %v2593_v43 = vadd.f32 %v1055_v32, %v2553_v19  ;;  %v2151_v26 = vld [vmem:[%s2671_s9 + $0x28] sm:$0xff]   ;;  %v2152_v27 = vld [vmem:[%s2671_s9 + $0x20] sm:$0xff]  }
 0x63b   :  { %v1025_v36 = vpop.f32.mrf.mxu0 }
 0x63c   :  { %v1056_v38 = vmax.f32 %v1034_v30, 0.0  ;;  %v1026_v20 = vadd.f32 %v1716_v15, %v1025_v36  ;;  %v2587_v41 = vadd.f32 %v1053_v29, %v2547_v31  ;;  %v1089_v53 = vmul.f32 %v1086_v49, %v2593_v43  ;;  %v2153_v29 = vld [vmem:[%s2671_s9 + $0x18] sm:$0xff]   ;;  %v1730_v30 = vld [vmem:[#allocation13 + $0x3] ss:$0 sm:$0xff] }
 0x63d   :  { %v1994_v40 = vpop.f32.mrf.mxu0 }
 0x63e   :  { %v2590_v42 = vadd.f32 %v1056_v38, %v2550_v18  ;;  %v1054_v17 = vmax.f32 %v1026_v20, 0.0  ;;  %v1047_v21 = vadd.f32 %v1994_v40, %v1716_v15  ;;  %v1087_v31 = vmul.f32 %v1086_v49, %v2587_v41 }
 0x63f   :  { %v1038_v45 = vpop.f32.mrf.mxu0 }
 0x640   :  { %v2596_v24 = vadd.f32 %v1054_v17, %v2556_v39  ;;  %v1039_v50 = vadd.f32 %v1716_v15, %v1038_v45  ;;  %v1090_v51 = vmul.f32 %v1086_v49, %v2590_v42  ;;  %v1059_v34 = vmax.f32 %v1047_v21, 0.0 }
 0x641   :  { %v1995_v33 = vpop.f32.mrf.mxu0 }
 0x642   :  { %v1088_v52 = vmul.f32 %v1086_v49, %v2596_v24  ;;  %v1057_v18 = vmax.f32 %v1039_v50, 0.0  ;;  %v1050_v19 = vadd.f32 %v1995_v33, %v1716_v15  ;;  %v1096_v23 = vpack.c.bf16 %v1090_v51, %v1089_v53 }
 0x643   :  { %v1041_v55 = vpop.f32.mrf.mxu0  ;;  %v2606_v46 = vadd.f32 %v1059_v34, %v2566_v35 }
 0x644   :  { %v1042_v56 = vadd.f32 %v1716_v15, %v1041_v55  ;;  %v1095_v57 = vpack.c.bf16 %v1088_v52, %v1087_v31  ;;  %v1060_v60 = vmax.f32 %v1050_v19, 0.0  ;;  %v2603_v39 = vadd.f32 %v1057_v18, %v2563_v28  ;;  %v2144_v15 = vld [vmem:[#allocation14 + $0x20] sm:$0xff]  }
 0x645   :  { %v1093_v28 = vmul.f32 %v1086_v49, %v2606_v46  ;;  %v1339_v55 = vstv %s1735_s12 }
 0x646   :  { %v1058_v61 = vmax.f32 %v1042_v56, 0.0  ;;  %2012 = vmatprep.mubr.bf16.mxu0 %v1095_v57  ;;  %v2609_v47 = vadd.f32 %v1060_v60, %v2569_v54  ;;  %v1091_v0 = vmul.f32 %v1086_v49, %v2603_v39 }
 0x647   :  { %2013 = vmatmul.mubr.bf16.vlgmr.msra.gmra.mxu0 %v1096_v23 }
 0x648   :  { %v2612_v63 = vadd.f32 %v1058_v61, %v2572_v37  ;;  %v1094_v48 = vmul.f32 %v1086_v49, %v2609_v47  ;;  %2061 = vmatpush3.bf16.msra.mxu0 %v2149_v25 }
 0x64a   :  { %v1092_v1 = vmul.f32 %v1086_v49, %v2612_v63  ;;  %v1098_v3 = vpack.c.bf16 %v1094_v48, %v1093_v28 }
 0x64c   :  { %v1097_v2 = vpack.c.bf16 %v1092_v1, %v1091_v0 }
 0x64e   :  { %2016 = vmatprep.mubr.bf16.mxu0 %v1097_v2 }
 0x64f   :  { %2017 = vmatmul.mubr.bf16.gmra.mxu0 %v1098_v3 }
 0x707   :  { %v2014_v35 = vpop.f32.mrf.mxu0 }
 0x709   :  { %v1198_v4 = vpop.f32.mrf.mxu0 }
 0x70b   :  { %v2015_v54 = vpop.f32.mrf.mxu0 }
 0x70c   :  { %v1230_v10 = vpack.c.bf16 %v2015_v54, %v2014_v35 }
 0x70d   :  { %v1201_v5 = vpop.f32.mrf.mxu0 }
 0x70e   :  { %v1229_v11 = vpack.c.bf16 %v1201_v5, %v1198_v4 }
 0x70f   :  { %v2018_v6 = vpop.f32.mrf.mxu0 }
 0x711   :  { %v1214_v7 = vpop.f32.mrf.mxu0 }
 0x713   :  { %v2019_v37 = vpop.f32.mrf.mxu0 }
 0x714   :  { %v1232_v44 = vpack.c.bf16 %v2019_v37, %v2018_v6 }
 0x715   :  { %v1217_v8 = vpop.f32.mrf.mxu0 }
 0x716   :  { %v1231_v9 = vpack.c.bf16 %v1217_v8, %v1214_v7  ;;  %2020 = vmatprep.subr.bf16.mxu1 %v1232_v44 }
 0x717   :  { %2021 = vmatpush3.bf16.msra.mxu1 %v1232_v44 }
 0x718   :  { %2022 = vmatprep.subr.bf16.mxu1 %v1231_v9 }
 0x71b   :  { %2023 = vmatpush3.bf16.msra.mxu1 %v1231_v9 }
 0x71c   :  { %2024 = vmatprep.subr.bf16.mxu1 %v1230_v10 }
 0x71f   :  { %2025 = vmatpush3.bf16.msra.mxu1 %v1230_v10 }
 0x720   :  { %2026 = vmatprep.subr.bf16.mxu1 %v1229_v11 }
 0x723   :  { %2027 = vmatpush3.bf16.msra.mxu1 %v1229_v11 }
 0x724   :  { %2036 = vmatprep.subr.bf16.mxu1 %v2141_v12 }
 0x726   :  { %2029 = vmatmul.mubr.msk.bf16.vlgmr.msra.gmra.mxu1 %vm469_vm1, %v2494_v58  ;;  %v2147_v58 = vld [vmem:[#allocation14 + $0x8] sm:$0xff]  }
 0x727   :  { %2032 = vmatprep.mubr.msk.bf16.mxu1 %vm469_vm1, %v2496_v59  ;;  %2037 = vmatpush3.bf16.msra.mxu1 %v2141_v12  ;;  %v2148_v59 = vld [vmem:[#allocation14] sm:$0xff]  }
 0x728   :  { %2038 = vmatprep.subr.bf16.mxu1 %v2142_v13  ;;  %v1736_v12 = vld [vmem:[#allocation16] ss:$0 sm:$0xff] }
 0x72b   :  { %2039 = vmatpush3.bf16.msra.mxu1 %v2142_v13 }
 0x72c   :  { %2040 = vmatprep.subr.bf16.mxu1 %v2143_v14 }
 0x72e   :  { %2033 = vmatmul.mubr.msk.bf16.gmra.mxu1 %vm469_vm1, %v2502_v62  ;;  %v2150_v62 = vld [vmem:[%s2671_s9 + $0x30] sm:$0xff]  }
 0x72f   :  { %2041 = vmatpush3.bf16.msra.mxu1 %v2143_v14  ;;  %2062 = vmatprep.subr.bf16.mxu0 %v2150_v62 }
 0x730   :  { %2042 = vmatprep.subr.bf16.mxu1 %v2144_v15  ;;  %2063 = vmatpush3.bf16.msra.mxu0 %v2150_v62 }
 0x731   :  { %2064 = vmatprep.subr.bf16.mxu0 %v2151_v26 }
 0x733   :  { %2043 = vmatpush3.bf16.msra.mxu1 %v2144_v15 }
 0x734   :  { %2044 = vmatprep.subr.bf16.mxu1 %v2145_v16  ;;  %2065 = vmatpush3.bf16.msra.mxu0 %v2151_v26 }
 0x735   :  { %2066 = vmatprep.subr.bf16.mxu0 %v2152_v27 }
 0x737   :  { %2045 = vmatpush3.bf16.msra.mxu1 %v2145_v16 }
 0x738   :  { %2046 = vmatprep.subr.bf16.mxu1 %v2146_v22  ;;  %2067 = vmatpush3.bf16.msra.mxu0 %v2152_v27 }
 0x739   :  { %2068 = vmatprep.subr.bf16.mxu0 %v2153_v29 }
 0x73b   :  { %2047 = vmatpush3.bf16.msra.mxu1 %v2146_v22 }
 0x73c   :  { %2048 = vmatprep.subr.bf16.mxu1 %v2147_v58  ;;  %2069 = vmatpush3.bf16.msra.mxu0 %v2153_v29 }
 0x73f   :  { %2049 = vmatpush3.bf16.msra.mxu1 %v2147_v58 }
 0x740   :  { %2050 = vmatprep.subr.bf16.mxu1 %v2148_v59 }
 0x743   :  { %2051 = vmatpush3.bf16.msra.mxu1 %v2148_v59 }
 0x7e6   :  { %v2030_v32 = vpop.f32.mrf.mxu1 }
 0x7e7   :  { %v1284_v36 = vadd.f32 %v2030_v32, %v1730_v30 }
 0x7e8   :  { %v1275_v38 = vpop.f32.mrf.mxu1 }
 0x7e9   :  { %v1276_v20 = vadd.f32 %v1730_v30, %v1275_v38  ;;  %v1308_v45 = vmax.f32 %v1284_v36, 0.0 }
 0x7ea   :  { %v2031_v40 = vpop.f32.mrf.mxu1 }
 0x7eb   :  { %v1306_v17 = vmax.f32 %v1276_v20, 0.0  ;;  %v1287_v21 = vadd.f32 %v2031_v40, %v1730_v30  ;;  %v1316_v53 = vadd.f32 %v1308_v45, %v2593_v43 }
 0x7ec   :  { %v1278_v49 = vpop.f32.mrf.mxu1 }
 0x7ed   :  { %v1309_v50 = vmax.f32 %v1287_v21, 0.0  ;;  %v1279_v51 = vadd.f32 %v1730_v30, %v1278_v49  ;;  %v1314_v31 = vadd.f32 %v1306_v17, %v2587_v41  ;;  %v1342_v1 = vmul.f32 %v1339_v55, %v1316_v53 }
 0x7ee   :  { %v2034_v33 = vpop.f32.mrf.mxu1 }
 0x7ef   :  { %v1317_v52 = vadd.f32 %v1309_v50, %v2590_v42  ;;  %v1307_v18 = vmax.f32 %v1279_v51, 0.0  ;;  %v1300_v34 = vadd.f32 %v2034_v33, %v1730_v30  ;;  %v1340_v61 = vmul.f32 %v1339_v55, %v1314_v31 }
 0x7f0   :  { %v1291_v19 = vpop.f32.mrf.mxu1 }
 0x7f1   :  { %v1315_v56 = vadd.f32 %v1307_v18, %v2596_v24  ;;  %v1292_v57 = vadd.f32 %v1730_v30, %v1291_v19  ;;  %v1343_v23 = vmul.f32 %v1339_v55, %v1317_v52  ;;  %v1312_v28 = vmax.f32 %v1300_v34, 0.0  ;;  %v1745_v52 = vld [vmem:[%s2672_s10] ss:$0 sm:$0xff]  ;;  %s1649_s10 = sshll.u32 %s2349_s8, 4  ;;  %s1650_s10 = int_to_ptr.vmem [resolvable:$true] %s1649_s10 }
 0x7f2   :  { %v2035_v60 = vpop.f32.mrf.mxu1  ;;  %s2305_s16 = scalar_lea.vmem %s1650_s10, 1024  ;;  %p2310_p8 = scmp.lt.s32.totalorder %s1650_s10, %s1650_s10 }
 0x7f3   :  { %v1341_v48 = vmul.f32 %v1339_v55, %v1315_v56  ;;  %v1310_v0 = vmax.f32 %v1292_v57, 0.0  ;;  %v1303_v2 = vadd.f32 %v2035_v60, %v1730_v30  ;;  %v1349_v35 = vpack.c.bf16 %v1343_v23, %v1342_v1  ;;  %p2306_p7 = scmp.ne.s32.totalorder %s1650_s10, %s2305_s16  ;;  %p2311_p9 = scmp.lt.s32.totalorder %s2305_s16, %s2305_s16 }
 0x7f4   :  { %v1294_v41 = vpop.f32.mrf.mxu1  ;;  %v1320_v24 = vadd.f32 %v1312_v28, %v2606_v46  ;;  %v2155_v46 = vld [vmem:[%s2671_s9 + $0x8] sm:$0xff]  }
 0x7f5   :  { %v1295_v3 = vadd.f32 %v1730_v30, %v1294_v41  ;;  %v1348_v42 = vpack.c.bf16 %v1341_v48, %v1340_v61  ;;  %v1313_v4 = vmax.f32 %v1303_v2, 0.0  ;;  %v1318_v43 = vadd.f32 %v1310_v0, %v2603_v39  ;;  %v2154_v39 = vld [vmem:[%s2671_s9 + $0x10] sm:$0xff]   ;;  %p2312_p10 = por %p2311_p9, %p2310_p8 }
 0x7f6   :  { %v1346_v8 = vmul.f32 %v1339_v55, %v1320_v24  ;;  %2070 = vmatprep.subr.bf16.mxu0 %v2154_v39 }
 0x7f7   :  { %v1311_v54 = vmax.f32 %v1295_v3, 0.0  ;;  %2052 = vmatprep.mubr.bf16.mxu1 %v1348_v42  ;;  %v1321_v5 = vadd.f32 %v1313_v4, %v2609_v47  ;;  %v1344_v37 = vmul.f32 %v1339_v55, %v1318_v43  ;;  %2071 = vmatpush3.bf16.msra.mxu0 %v2154_v39  ;;  %v2156_v47 = vld [vmem:[%s2671_s9] sm:$0xff]   ;;  %p2313_p11 = pnand %p2312_p10, %p2306_p7 }
 0x7f8   :  { %2053 = vmatmul.mubr.bf16.vlgmr.msra.gmra.mxu1 %v1349_v35  ;;  %2072 = vmatprep.subr.bf16.mxu0 %v2155_v46 }
 0x7f9   :  { %v1319_v6 = vadd.f32 %v1311_v54, %v2612_v63  ;;  %v1347_v7 = vmul.f32 %v1339_v55, %v1321_v5 }
 0x7fb   :  { %v1345_v44 = vmul.f32 %v1339_v55, %v1319_v6  ;;  %v1351_v10 = vpack.c.bf16 %v1347_v7, %v1346_v8  ;;  %2073 = vmatpush3.bf16.msra.mxu0 %v2155_v46 }
 0x7fc   :  { %2074 = vmatprep.subr.bf16.mxu0 %v2156_v47 }
 0x7fd   :  { %v1350_v9 = vpack.c.bf16 %v1345_v44, %v1344_v37 }
 0x7ff   :  { %2056 = vmatprep.mubr.bf16.mxu1 %v1350_v9  ;;  %2075 = vmatpush3.bf16.msra.mxu0 %v2156_v47 }
 0x800   :  { %2057 = vmatmul.mubr.bf16.gmra.mxu1 %v1351_v10 }
 0x8b8   :  { %v2054_v63 = vpop.f32.mrf.mxu1 }
 0x8b9   :  { %v1466_v16 = vadd.f32 %v2054_v63, %v1736_v12 }
 0x8ba   :  { %v1457_v11 = vpop.f32.mrf.mxu1 }
 0x8bb   :  { %v1458_v14 = vadd.f32 %v1736_v12, %v1457_v11  ;;  %v1490_v27 = vmax.f32 %v1466_v16, 0.0 }
 0x8bc   :  { %v2055_v13 = vpop.f32.mrf.mxu1 }
 0x8bd   :  { %v1469_v15 = vadd.f32 %v2055_v13, %v1736_v12  ;;  %v1488_v62 = vmax.f32 %v1458_v14, 0.0 }
 0x8be   :  { %v1460_v22 = vpop.f32.mrf.mxu1 }
 0x8bf   :  { %v1461_v58 = vadd.f32 %v1736_v12, %v1460_v22  ;;  %v1491_v59 = vmax.f32 %v1469_v15, 0.0 }
 0x8c0   :  { %v2058_v25 = vpop.f32.mrf.mxu1 }
 0x8c1   :  { %v1489_v26 = vmax.f32 %v1461_v58, 0.0  ;;  %v1497_v32 = vpack.c.bf16 %v1491_v59, %v1490_v27  ;;  %v1482_v40 = vadd.f32 %v2058_v25, %v1736_v12 }
 0x8c2   :  { %v1473_v29 = vpop.f32.mrf.mxu1 }
 0x8c3   :  { %v1496_v30 = vpack.c.bf16 %v1489_v26, %v1488_v62  ;;  %v1474_v38 = vadd.f32 %v1736_v12, %v1473_v29  ;;  %v1494_v51 = vmax.f32 %v1482_v40, 0.0 }
 0x8c4   :  { %v2059_v36 = vpop.f32.mrf.mxu1 }
 0x8c5   :  { %v1485_v20 = vadd.f32 %v2059_v36, %v1736_v12  ;;  %2076 = vmatprep.mubr.bf16.mxu0 %v1496_v30  ;;  %v1492_v49 = vmax.f32 %v1474_v38, 0.0 }
 0x8c6   :  { %v1476_v17 = vpop.f32.mrf.mxu1  ;;  %2077 = vmatmul.mubr.bf16.vlgmr.msra.gmra.mxu0 %v1497_v32 }
 0x8c7   :  { %v1477_v21 = vadd.f32 %v1736_v12, %v1476_v17  ;;  %v1495_v45 = vmax.f32 %v1485_v20, 0.0 }
 0x8c9   :  { %v1493_v50 = vmax.f32 %v1477_v21, 0.0  ;;  %v1499_v31 = vpack.c.bf16 %v1495_v45, %v1494_v51 }
 0x8cb   :  { %v1498_v33 = vpack.c.bf16 %v1493_v50, %v1492_v49 }
 0x8cd   :  { %2080 = vmatprep.mubr.bf16.mxu0 %v1498_v33 }
 0x8ce   :  { %2081 = vmatmul.mubr.bf16.gmra.mxu0 %v1499_v31 }
 0x986   :  { %v2078_v18 = vpop.f32.mrf.mxu0 }
 0x987   :  { %v1614_v53 = vadd.f32 %v2078_v18, %v1745_v52 }
 0x988   :  { %v1605_v34 = vpop.f32.mrf.mxu0 }
 0x989   :  { %1638 = vst [vmem:[#allocation17 + $0x10] sm:$0xff] %v1614_v53  ;;  %v1606_v19 = vadd.f32 %v1745_v52, %v1605_v34 }
 0x98a   :  { %v2079_v55 = vpop.f32.mrf.mxu0 }
 0x98b   :  { %1636 = vst [vmem:[#allocation17] sm:$0xff] %v1606_v19  ;;  %v1617_v56 = vadd.f32 %v2079_v55, %v1745_v52 }
 0x98c   :  { %v1608_v57 = vpop.f32.mrf.mxu0 }
 0x98d   :  { %1639 = vst [vmem:[#allocation17 + $0x18] sm:$0xff] %v1617_v56  ;;  %v1609_v23 = vadd.f32 %v1745_v52, %v1608_v57 }
 0x98e   :  { %v2082_v60 = vpop.f32.mrf.mxu0 }
 0x98f   :  { %1637 = vst [vmem:[#allocation17 + $0x8] sm:$0xff] %v1609_v23  ;;  %v1630_v61 = vadd.f32 %v2082_v60, %v1745_v52 }
 0x990   :  { %v1621_v48 = vpop.f32.mrf.mxu0 }
 0x991   :  { %1642 = vst [vmem:[#allocation17 + $0x30] sm:$0xff] %v1630_v61  ;;  %v1622_v0 = vadd.f32 %v1745_v52, %v1621_v48 }
 0x992   :  { %v2083_v1 = vpop.f32.mrf.mxu0 }
 0x993   :  { %1640 = vst [vmem:[#allocation17 + $0x20] sm:$0xff] %v1622_v0  ;;  %v1633_v28 = vadd.f32 %v2083_v1, %v1745_v52 }
 0x994   :  { %v1624_v2 = vpop.f32.mrf.mxu0 }
 0x995   :  { %1643 = vst [vmem:[#allocation17 + $0x38] sm:$0xff] %v1633_v28  ;;  %v1625_v41 = vadd.f32 %v1745_v52, %v1624_v2 }
 0x997   :  { %1641 = vst [vmem:[#allocation17 + $0x28] sm:$0xff] %v1625_v41 }
 0x998   :  { %2316 = shalt.err (!%p2313_p11)
}
 0x999   :  { %s2350_s17 = smov 128   ;;  %s2351_s18 = smov 8  }
 0x99a   :  { %1655 = dma.vmem_to_hbm [thread:$0]  %s1650_s10, 1024, %s2673_s11, [#allocation5], %s2350_s17, %s2350_s17, %s2351_s18  }
 0x99b   :  { %2335 = dma.done.wait [#allocation5], 1024  }
 0x99c   :  { %2336 = vsyncadd [#allocation5], 4294966272 }
 0x99d   :  { %1659 = vsyncpa [#allocation4], 1 }
 0x99e   :  { %1660 = vsyncpa [#allocation9], 1 }
 0x99f   :  { %1661 = vsyncpa [#allocation12], 1 }
 0x9a0   :  { %1662 = vsyncpa [#allocation15], 1 }
 0x9a1   :  { %1663 = vsyncpa [#allocation5], 1 }
 0x9a2   :  { %1664 = vsyncpa [#allocation6], 1 }

</bundles_post_ra>
